<compile_context>
chip_gen: v6e
topology: v6e:2x2x1
jax: 0.10.0
libtpu: 0.0.40
codegen_flags: <defaults>
</compile_context>

<pallas_src>
import math

import jax
import jax.numpy as jnp
from jax.experimental import pallas as pl
from jax.experimental.pallas import tpu as pltpu


def _pick_tile(dim, cap, align):
    """Largest divisor of `dim` that is a multiple of `align` and <= `cap`.

    Falls back to the full dimension (a block equal to the array extent is
    always a legal TPU block shape)."""
    t = (min(cap, dim) // align) * align
    while t >= align:
        if dim % t == 0:
            return t
        t -= align
    return dim


def hybrid_embed_kernel(x_ref, w_ref, b_ref, o_ref):
    # x_ref: (tm, K)   folded (batch*token) rows of the flattened feature map
    # w_ref: (K, te)   proj weight, transposed to (in, out) layout
    # b_ref: (1, te)   proj bias
    # o_ref: (tm, te)  projected embeddings
    acc = jnp.dot(x_ref[...], w_ref[...], preferred_element_type=jnp.float32)
    o_ref[...] = (acc + b_ref[...]).astype(o_ref.dtype)


def hybrid_embed(x, proj_w, proj_b, *, compute_dtype=None):
    """Pallas port of HybridEmbed.forward.

    x:       (B, C_in, H, W)   CNN feature map
    proj_w:  (embed_dim, C_in) torch nn.Linear weight layout (out, in)
    proj_b:  (embed_dim,)
    returns: (B, H*W, embed_dim)

    compute_dtype: optionally jnp.bfloat16 to run the MXU matmul in bf16 with
    f32 accumulation (faster on all TPU generations, slight numeric drift).
    """
    B, C, H, W = x.shape
    E = proj_w.shape[0]
    N = H * W
    M = B * N
    K = C

    # flatten(2).transpose(1, 2), then fold batch into the matmul row axis.
    # (wrapper-side layout plumbing so the kernel sees one big lane-dense GEMM)
    x2d = x.reshape(B, C, N).transpose(0, 2, 1).reshape(M, K)
    w_t = proj_w.T                      # (K, E)
    b2d = proj_b.reshape(1, E)          # bias kept in f32
    out_dtype = x.dtype

    if compute_dtype is not None:
        x2d = x2d.astype(compute_dtype)
        w_t = w_t.astype(compute_dtype)

    # Tile the row (B*N) and embed_dim axes; keep K (input_dim) whole per block.
    tm = _pick_tile(M, 256, 8)
    if M // tm < 2 and M >= 16:
        # make sure the parallel grid has >= 2 steps so both v7x cores get work
        tm = _pick_tile(M, max(8, M // 2), 8)
    te = _pick_tile(E, 512, 128)
    grid = (M // tm, E // te)

    elt = jnp.dtype(x2d.dtype).itemsize
    blk_bytes = elt * (tm * K + K * te) + 4 * (te + tm * te)
    vmem_limit = int(min(100 * 2**20, max(4 * 2**20, 4 * blk_bytes)))

    cost = pl.CostEstimate(
        flops=2 * M * K * E,
        transcendentals=0,
        bytes_accessed=elt * (M * K + K * E) + 4 * (E + M * E),
    )

    out2d = pl.pallas_call(
        hybrid_embed_kernel,
        out_shape=jax.ShapeDtypeStruct((M, E), out_dtype),
        grid_spec=pltpu.PrefetchScalarGridSpec(
            num_scalar_prefetch=0,
            grid=grid,
            in_specs=[
                pl.BlockSpec((tm, K), lambda i, j: (i, 0)),
                # constant along the row axis -> stays resident in VMEM
                pl.BlockSpec((K, te), lambda i, j: (0, j)),
                pl.BlockSpec((1, te), lambda i, j: (0, j)),
            ],
            out_specs=pl.BlockSpec((tm, te), lambda i, j: (i, j)),
        ),
        compiler_params=pltpu.CompilerParams(
            dimension_semantics=("parallel", "parallel"),
            vmem_limit_bytes=vmem_limit,
        ),
        cost_estimate=cost,
    )(x2d, w_t, b2d)

    return out2d.reshape(B, N, E)


def reference_hybrid_embed(x, proj_w, proj_b):
    """Pure-JAX replica of the PyTorch forward (for verification)."""
    B, C, H, W = x.shape
    xt = x.reshape(B, C, H * W).transpose(0, 2, 1)     # flatten(2).transpose(1,2)
    return xt @ proj_w.T + proj_b


if __name__ == "__main__":
    # Small shapes consistent with the module (CNN feature map -> token embed).
    B, C_in, H, W = 2, 128, 16, 16
    embed_dim = 256

    key = jax.random.PRNGKey(0)
    kx, kw, kb = jax.random.split(key, 3)
    x = jax.random.normal(kx, (B, C_in, H, W), jnp.float32)
    bound = 1.0 / math.sqrt(C_in)
    proj_w = jax.random.uniform(kw, (embed_dim, C_in), jnp.float32, -bound, bound)
    proj_b = jax.random.uniform(kb, (embed_dim,), jnp.float32, -bound, bound)

    # Exact (f32) path.
    out = jax.block_until_ready(hybrid_embed(x, proj_w, proj_b))
    ref = reference_hybrid_embed(x, proj_w, proj_b)
    assert out.shape == (B, H * W, embed_dim)
    assert jnp.allclose(out, ref, atol=1e-4, rtol=1e-4)

    # bf16-MXU path (f32 accumulation) -- looser tolerance, per review.
    out_bf16 = jax.block_until_ready(
        hybrid_embed(x, proj_w, proj_b, compute_dtype=jnp.bfloat16))
    assert out_bf16.shape == (B, H * W, embed_dim)
    assert jnp.allclose(out_bf16, ref, atol=5e-2, rtol=5e-2)

    print("KERNEL_OK")
</pallas_src>

<mosaic_0001>
module attributes {stable_mosaic.version = 11 : i64} {
  func.func @hybrid_embed_kernel(%arg0: i32, %arg1: i32, %arg2: memref<256x128xf32, #tpu.memory_space<vmem>>, %arg3: memref<128x256xf32, #tpu.memory_space<vmem>>, %arg4: memref<1x256xf32, #tpu.memory_space<vmem>>, %arg5: memref<256x256xf32, #tpu.memory_space<vmem>>) attributes {dimension_semantics = [#tpu.dimension_semantics<parallel>, #tpu.dimension_semantics<parallel>], iteration_bounds = array<i64: 2, 1>, scalar_prefetch = 0 : i64, scratch_operands = 0 : i64, tpu.core_type = #tpu.core_type<tc>, window_params = [{transform_indices = @transform_0, window_bounds = array<i64: 256, 128>}, {transform_indices = @transform_1, window_bounds = array<i64: 128, 256>}, {transform_indices = @transform_2, window_bounds = array<i64: 1, 256>}, {transform_indices = @transform_3, window_bounds = array<i64: 256, 256>}]} {
    %c0 = arith.constant 0 : index
    %c0_0 = arith.constant 0 : index
    %0 = vector.load %arg2[%c0, %c0_0] : memref<256x128xf32, #tpu.memory_space<vmem>>, vector<256x128xf32>
    %c0_1 = arith.constant 0 : index
    %c0_2 = arith.constant 0 : index
    %1 = vector.load %arg3[%c0_1, %c0_2] : memref<128x256xf32, #tpu.memory_space<vmem>>, vector<128x256xf32>
    %cst = arith.constant dense<0.000000e+00> : vector<256x256xf32>
    %2 = tpu.matmul %0, %1, %cst {dimension_numbers = #tpu.dot_dimension_numbers<[1], [0], [0], [1], [0, 0, 1, 1], [], []>} : vector<256x128xf32>, vector<128x256xf32>, vector<256x256xf32> -> vector<256x256xf32>
    %c0_3 = arith.constant 0 : index
    %c0_4 = arith.constant 0 : index
    %3 = vector.load %arg4[%c0_3, %c0_4] : memref<1x256xf32, #tpu.memory_space<vmem>>, vector<1x256xf32>
    %4 = vector.broadcast %3 : vector<1x256xf32> to vector<256x256xf32>
    %5 = arith.addf %2, %4 : vector<256x256xf32>
    %c0_5 = arith.constant 0 : index
    %c0_6 = arith.constant 0 : index
    %6 = vector.load %arg5[%c0_5, %c0_6] : memref<256x256xf32, #tpu.memory_space<vmem>>, vector<256x256xf32>
    tpu.vector_store %arg5[%c0_5, %c0_6], %5 {strides = array<i32>} : memref<256x256xf32, #tpu.memory_space<vmem>>, vector<256x256xf32>,
    return
  }
  func.func @transform_0(%arg0: i32, %arg1: i32) -> (i32, i32) {
    %c0_i32 = arith.constant 0 : i32
    %c0_i32_0 = arith.constant 0 : i32
    return %arg0, %c0_i32 : i32, i32
  }
  func.func @transform_1(%arg0: i32, %arg1: i32) -> (i32, i32) {
    %c0_i32 = arith.constant 0 : i32
    %c0_i32_0 = arith.constant 0 : i32
    return %c0_i32, %arg1 : i32, i32
  }
  func.func @transform_2(%arg0: i32, %arg1: i32) -> (i32, i32) {
    %c0_i32 = arith.constant 0 : i32
    %c0_i32_0 = arith.constant 0 : i32
    return %c0_i32, %arg1 : i32, i32
  }
  func.func @transform_3(%arg0: i32, %arg1: i32) -> (i32, i32) {
    %c0_i32 = arith.constant 0 : i32
    return %arg0, %arg1 : i32, i32
  }
}

</mosaic_0001>

<bundles_post_ra>
// kernel: tpu_custom_call.1
= control target key start
LH: loop header
LB: loop body
LE: loop exit
PB: predicated region body
PF: predicated region fallthrough
CT: control target
= control target key end

     0   :  { %8 = vsyncpa [#allocation3], 0  ;;  %s1461_s0 = inlined_call_operand.hbm [shape: f32[512,128], index: 0, kind: input, shape index: {}]   ;;  %s1462_s1 = inlined_call_operand.hbm [shape: f32[128,256], index: 1, kind: input, shape index: {}]   ;;  %s1463_s2 = inlined_call_operand.vmem [shape: f32[1,256], index: 2, kind: input, shape index: {}]   ;;  %s1464_s3 = inlined_call_operand.hbm [shape: f32[512,256], index: 3, kind: output, shape index: {}]  }
   0x1   :  { %10 = vsyncpa [#allocation3 + $0x1], 0 }
   0x2   :  { %11 = vsyncpa [#allocation6], 0 }
   0x3   :  { %12 = vsyncpa [#allocation4], 0 }
   0x4   :  { %14 = vsyncpa [#allocation4 + $0x1], 0  ;;  %s1075_s12 = smov 0   ;;  %s1077_s13 = smov 0  }
   0x5   :  { %s1079_s14 = smov 0   ;;  %s1081_s15 = smov 0  }
   0x6   :  { %s1083_s16 = smov 0   ;;  %s1085_s17 = smov 0  }
   0x7 LB: > { %s771_s18 = sadd.s32 4294967295, %s1043_s17   ;;  %s772_s19 = sadd.s32 4294967294, %s1043_s17   ;;  %s1043_s17 = sphi %s1085_s17, %s20_s17   ;;  %s1039_s16 = sphi %s1083_s16, %s1482_s16   ;;  %s1035_s15 = sphi %s1081_s15, %s1481_s15   ;;  %s1031_s14 = sphi %s1079_s14, %s1480_s14   ;;  %s1027_s13 = sphi %s1077_s13, %s1479_s13   ;;  %s1023_s12 = sphi %s1075_s12, %s1478_s12  }
   0x8   : > { %p52_p0 = scmp.ne.s32.totalorder %s1027_s13, %s1023_s12  ;;  %p1109_p1 = scmp.eq.s32.totalorder %s771_s18, 0 }
   0x9   : > { %p1113_p2 = scmp.eq.s32.totalorder %s771_s18, 1  ;;  %p136_p3 = scmp.eq.s32.totalorder %s772_s19, 1 }
   0xa   : > { %p1119_p4 = por %p1109_p1, %p52_p0  ;;  %p773_p5 = scmp.ge.s32.totalorder %s1043_s17, 1 }
   0xb   : > { %p1124_p6 = por %p136_p3, %p52_p0  ;;  %p143_p7 = scmp.lt.s32.totalorder %s1043_s17, 3 }
   0xc   : > { %s1468_s22 = scalar_select %p1119_p4, 1, 0 }
   0xd   : > { %s1469_s23 = scalar_select %p1124_p6, 1, 0 }
   0xe   : > { %p1129_p8 = pnand %p773_p5, %p143_p7  ;;  %s1045_s25 = smov [#allocation5]  }
   0xf   : > { %s158_s26 = sshll.u32 %s1045_s25, 4  ;;  %s32_s28 = sadd.s32 1, %s1039_s16  ;;  %s159_s26 = int_to_ptr.vmem [resolvable:$true] %s158_s26 }
  0x10   : > { %p833_p9 = pneg %p1129_p8  ;;  %s916_s29 = scalar_lea.vmem %s159_s26, 4096 }
  0x11   : > { %p917_p13 = scmp.ne.s32.totalorder %s159_s26, %s916_s29  ;;  %p924_p5 = scmp.lt.s32.totalorder %s159_s26, %s159_s26 }
  0x12   : > { %p1138_p11 = pnand %p833_p9, %p1109_p1  ;;  %p925_p7 = scmp.lt.s32.totalorder %s916_s29, %s916_s29 }
  0x14   : > { %p907_p12 = pneg %p1138_p11  ;;  %p926_p6 = por %p925_p7, %p924_p5 }
  0x16   : > { %p919_p0 = pnand %p917_p13, %p907_p12 }
  0x18   : > { %p920_p3 = pneg %p919_p0 }
  0x1a   : > { %p927_p4 = pnand %p926_p6, %p920_p3 }
  0x1c   : > { %930 = shalt.err (!%p927_p4)
}
  0x1d   : > { %s1046_s30 = smov 256   ;;  %s1047_s4 = smov 16  }
  0x1e   : > { %836 = dma.hbm_to_vmem [thread:$0]  (!%p1138_p11), %s1462_s1, 4096, %s159_s26, [#allocation6], %s1046_s30, %s1046_s30, %s1047_s4  }
  0x1f   : > { %p34_p6 = scmp.ge.s32.totalorder %s32_s28, 2  ;;  %s39_s7 = sadd.s32 1, %s1031_s14 }
  0x20   : > { %p46_p4 = scmp.ne.s32.totalorder %s1031_s14, %s1027_s13  ;;  %p47_p9 = scmp.eq.s32.totalorder %s1043_s17, 0 }
  0x21   : > { %s1484_s28 = smov (%p34_p6, %s32_s28), 0  ;;  %p846_p0 = scmp.lt.s32.totalorder %s1043_s17, 2 }
  0x22   : > { %p1156_p12 = por %p47_p9, %p46_p4  ;;  %p1162_p13 = por %p1113_p2, %p46_p4 }
  0x23   : > { %s36_s10 = ssub.s32 %s1039_s16, %s1484_s28  ;;  %s180_s11 = sand.u32 1, %s1031_s14  }
  0x24   : > { %p37_p11 = scmp.eq.s32.totalorder %s36_s10, 0  ;;  %s777_s18 = sshll.u32 %s180_s11, 8 }
  0x25   : > { %s790_s25 = sshll.u32 %s1039_s16, 12  ;;  %s184_s30 = scalar_lea.vmem [#allocation2], %s777_s18 }
  0x26   : > { %s1171_s19 = scalar_select %p37_p11, %s1031_s14, %s39_s7  }
  0x27   : > { %s190_s29 = scalar_lea.hbm %s1461_s0, %s790_s25  ;;  %s191_s4 = sshll.u32 %s184_s30, 4  ;;  %s192_s4 = int_to_ptr.vmem [resolvable:$true] %s191_s4 }
  0x28   : > { %p1179_p2 = pnand %p846_p0, %p1156_p12  ;;  %s181_s5 = scalar_lea.sflag [#allocation3], %s180_s11 }
  0x29   : > { %s944_s6 = scalar_lea.vmem %s192_s4, 4096  ;;  %s1048_s7 = smov [#allocation2]  }
  0x2a   : > { %p933_p3 = pneg %p1179_p2  ;;  %p945_p5 = scmp.ne.s32.totalorder %s192_s4, %s944_s6 }
  0x2b   : > { %s949_s10 = sshll.u32 %s1048_s7, 4  ;;  %s950_s10 = int_to_ptr.vmem [resolvable:$false] %s949_s10 }
  0x2c   : > { %p947_p7 = pnand %p945_p5, %p933_p3  ;;  %s951_s25 = scalar_lea.vmem %s950_s10, 8192 }
  0x2d   : > { %p952_p4 = scmp.lt.s32.totalorder %s192_s4, %s950_s10  ;;  %p953_p9 = scmp.lt.s32.totalorder %s951_s25, %s944_s6 }
  0x2e   : > { %p948_p6 = pneg %p947_p7 }
  0x2f   : > { %p954_p11 = por %p953_p9, %p952_p4 }
  0x31   : > { %p955_p10 = pnand %p954_p11, %p948_p6 }
  0x33   : > { %958 = shalt.err (!%p955_p10)
}
  0x34   : > { %s1049_s8 = smov 128   ;;  %s1050_s18 = smov 8  }
  0x35   : > { %840 = dma.hbm_to_vmem [thread:$0]  (!%p1179_p2), %s190_s29, 4096, %s192_s4, %s181_s5, %s1049_s8, %s1049_s8, %s1050_s18  }
  0x36   : > { %203 = sbr.rel (%p1129_p8) target bundleno = 367 (0x16f), region = 32  ;;  %s1190_s11 = sand.u32 (!%p1129_p8), 1, %s1027_s13  }
  0x37   : > { %s781_s26 = sshll.u32 (!%p1129_p8), %s1190_s11, 8  ;;  %s206_s27 = scalar_lea.sflag (!%p1129_p8), [#allocation3], %s1190_s11 }
  0x38   : > { %s1194_s30 = scalar_lea.vmem (!%p1129_p8), [#allocation2], %s781_s26  ;;  %p1475_p12 = scmp.ne.s32.totalorder (!%p1129_p8), %s1468_s22, 0 }
  0x3b   : > { %1010 = dma.done.wait (%p1475_p12), %s206_s27, 4096  }
  0x3c   : > { %1012 = vsyncadd (%p1475_p12), %s206_s27, 4294963200 }
  0x3d   : > { %1014 = dma.done.wait (%p1109_p1), [#allocation6], 4096  }
  0x3e   : > { %1016 = vsyncadd (%p1109_p1), [#allocation6], 4294963200  ;;  %v1051_v0 = vmov 0.0   ;;  %v312_v1 = vld [vmem:[#allocation5 + $0xf8] sm:$0xff]  ;;  %v311_v2 = vld [vmem:[#allocation5 + $0xf0] sm:$0xff]  ;;  %s783_s24 = sshll.u32 %s1190_s11, 9 }
  0x3f   : > { %389 = vmatprep.mubr.f32.mxu0 %v1051_v0  ;;  %485 = vmatprep.mubr.f32.mxu1 %v1051_v0  ;;  %v310_v3 = vld [vmem:[#allocation5 + $0xe8] sm:$0xff]  ;;  %v309_v4 = vld [vmem:[#allocation5 + $0xe0] sm:$0xff]  ;;  %v308_v5 = vld [vmem:[#allocation5 + $0xd8] sm:$0xff]  ;;  %s1278_s29 = scalar_lea.vmem [#allocation7], %s783_s24  ;;  %s792_s4 = sshll.u32 %s1035_s15, 13 }
  0x40   : > { %325 = vmatprep.subr.mxu0 %v312_v1  ;;  %793 = vmatprep.subr.mxu1 %v312_v1  ;;  %v307_v6 = vld [vmem:[#allocation5 + $0xd0] sm:$0xff]  ;;  %v306_v7 = vld [vmem:[#allocation5 + $0xc8] sm:$0xff]  ;;  %v305_v8 = vld [vmem:[#allocation5 + $0xc0] sm:$0xff]  ;;  %s663_s21 = sshll.u32 %s1278_s29, 4  ;;  %s1405_s7 = scalar_lea.hbm %s1464_s3, %s792_s4  ;;  %s1407_s21 = int_to_ptr.vmem [resolvable:$true] %s663_s21 }
  0x41   : > { %326 = vmatpush1.msra.mxu0 %v311_v2  ;;  %809 = vmatpush1.msra.mxu1 %v311_v2  ;;  %v304_v9 = vld [vmem:[#allocation5 + $0xb8] sm:$0xff]  ;;  %v303_v10 = vld [vmem:[#allocation5 + $0xb0] sm:$0xff]  ;;  %v302_v11 = vld [vmem:[#allocation5 + $0xa8] sm:$0xff]  ;;  %v315_v2 = vlaneseq  ;;  %s647_s15 = scalar_lea.sflag [#allocation4], %s1190_s11  ;;  %s959_s10 = scalar_lea.vmem %s1407_s21, 8192 }
  0x42   : > { %327 = vmatprep.subr.mxu0 %v310_v3  ;;  %794 = vmatprep.subr.mxu1 %v310_v3  ;;  %v301_v12 = vld [vmem:[#allocation5 + $0xa0] sm:$0xff]  ;;  %v300_v13 = vld [vmem:[#allocation5 + $0x98] sm:$0xff]  ;;  %v299_v14 = vld [vmem:[#allocation5 + $0x90] sm:$0xff]  ;;  %p960_p1 = scmp.ne.s32.totalorder %s1407_s21, %s959_s10  ;;  %s1052_s25 = smov [#allocation7]  }
  0x43   : > { %328 = vmatpush1.msra.mxu0 %v309_v4  ;;  %810 = vmatpush1.msra.mxu1 %v309_v4  ;;  %v298_v15 = vld [vmem:[#allocation5 + $0x88] sm:$0xff]  ;;  %v297_v16 = vld [vmem:[#allocation5 + $0x80] sm:$0xff]  ;;  %v296_v17 = vld [vmem:[#allocation5 + $0x78] sm:$0xff]  ;;  %v316_v3 = vshrl.u32 %v315_v2, 7  ;;  %s963_s8 = sshll.u32 %s1052_s25, 4  ;;  %s964_s8 = int_to_ptr.vmem [resolvable:$false] %s963_s8 }
  0x44   : > { %329 = vmatprep.subr.mxu0 %v308_v5  ;;  %795 = vmatprep.subr.mxu1 %v308_v5  ;;  %v295_v18 = vld [vmem:[#allocation5 + $0x70] sm:$0xff]  ;;  %v294_v19 = vld [vmem:[#allocation5 + $0x68] sm:$0xff]  ;;  %v293_v20 = vld [vmem:[#allocation5 + $0x60] sm:$0xff]  ;;  %p961_p8 = pnand %p960_p1, %p1162_p13  ;;  %s965_s18 = scalar_lea.vmem %s964_s8, 16384 }
  0x45   : > { %330 = vmatpush1.msra.mxu0 %v307_v6  ;;  %811 = vmatpush1.msra.mxu1 %v307_v6  ;;  %v292_v21 = vld [vmem:[#allocation5 + $0x58] sm:$0xff]  ;;  %v291_v22 = vld [vmem:[#allocation5 + $0x50] sm:$0xff]  ;;  %v290_v23 = vld [vmem:[#allocation5 + $0x48] sm:$0xff]  ;;  %v317_v4 = vsub.s32 0, %v316_v3  ;;  %v321_v6 = vsub.s32 1, %v316_v3  ;;  %p966_p0 = scmp.lt.s32.totalorder %s1407_s21, %s964_s8  ;;  %p967_p2 = scmp.lt.s32.totalorder %s965_s18, %s959_s10 }
  0x46   : > { %331 = vmatprep.subr.mxu0 %v306_v7  ;;  %796 = vmatprep.subr.mxu1 %v306_v7  ;;  %v289_v24 = vld [vmem:[#allocation5 + $0x40] sm:$0xff]  ;;  %v288_v25 = vld [vmem:[#allocation5 + $0x38] sm:$0xff]  ;;  %v287_v26 = vld [vmem:[#allocation5 + $0x30] sm:$0xff]  ;;  %p962_p10 = pneg %p961_p8 }
  0x47   : > { %332 = vmatpush1.msra.mxu0 %v305_v8  ;;  %812 = vmatpush1.msra.mxu1 %v305_v8  ;;  %v286_v27 = vld [vmem:[#allocation5 + $0x28] sm:$0xff]  ;;  %v285_v28 = vld [vmem:[#allocation5 + $0x20] sm:$0xff]  ;;  %v284_v29 = vld [vmem:[#allocation5 + $0x18] sm:$0xff]  ;;  %p968_p3 = por %p967_p2, %p966_p0 }
  0x48   : > { %333 = vmatprep.subr.mxu0 %v304_v9  ;;  %797 = vmatprep.subr.mxu1 %v304_v9  ;;  %v283_v30 = vld [vmem:[#allocation5 + $0x10] sm:$0xff]  ;;  %v282_v31 = vld [vmem:[#allocation5 + $0x8] sm:$0xff]  ;;  %v281_v32 = vld [vmem:[#allocation5] sm:$0xff] }
  0x49   : > { %334 = vmatpush1.msra.mxu0 %v303_v10  ;;  %813 = vmatpush1.msra.mxu1 %v303_v10  ;;  %v249_v33 = vld [vmem:[%s1194_s30] sm:$0xff]  ;;  %v250_v35 = vld [vmem:[%s1194_s30 + $0x8] sm:$0xff]  ;;  %v251_v37 = vld [vmem:[%s1194_s30 + $0x10] sm:$0xff]  ;;  %p969_p5 = pnand %p968_p3, %p962_p10 }
  0x4a   : > { %335 = vmatprep.subr.mxu0 %v302_v11  ;;  %798 = vmatprep.subr.mxu1 %v302_v11  ;;  %v265_v34 = vld [vmem:[%s1194_s30 + $0x80] sm:$0xff]  ;;  %v266_v36 = vld [vmem:[%s1194_s30 + $0x88] sm:$0xff]  ;;  %v267_v38 = vld [vmem:[%s1194_s30 + $0x90] sm:$0xff] }
  0x4b   : > { %336 = vmatpush1.msra.mxu0 %v301_v12  ;;  %814 = vmatpush1.msra.mxu1 %v301_v12  ;;  %v252_v39 = vld [vmem:[%s1194_s30 + $0x18] sm:$0xff]  ;;  %v253_v41 = vld [vmem:[%s1194_s30 + $0x20] sm:$0xff]  ;;  %v254_v43 = vld [vmem:[%s1194_s30 + $0x28] sm:$0xff] }
  0x4c   : > { %337 = vmatprep.subr.mxu0 %v300_v13  ;;  %799 = vmatprep.subr.mxu1 %v300_v13  ;;  %v268_v40 = vld [vmem:[%s1194_s30 + $0x98] sm:$0xff]  ;;  %v269_v42 = vld [vmem:[%s1194_s30 + $0xa0] sm:$0xff]  ;;  %v270_v44 = vld [vmem:[%s1194_s30 + $0xa8] sm:$0xff] }
  0x4d   : > { %338 = vmatpush1.msra.mxu0 %v299_v14  ;;  %815 = vmatpush1.msra.mxu1 %v299_v14  ;;  %v255_v45 = vld [vmem:[%s1194_s30 + $0x30] sm:$0xff]  ;;  %v256_v47 = vld [vmem:[%s1194_s30 + $0x38] sm:$0xff]  ;;  %v257_v49 = vld [vmem:[%s1194_s30 + $0x40] sm:$0xff] }
  0x4e   : > { %339 = vmatprep.subr.mxu0 %v298_v15  ;;  %800 = vmatprep.subr.mxu1 %v298_v15  ;;  %v271_v46 = vld [vmem:[%s1194_s30 + $0xb0] sm:$0xff]  ;;  %v272_v48 = vld [vmem:[%s1194_s30 + $0xb8] sm:$0xff]  ;;  %v273_v50 = vld [vmem:[%s1194_s30 + $0xc0] sm:$0xff] }
  0x4f   : > { %340 = vmatpush1.msra.mxu0 %v297_v16  ;;  %816 = vmatpush1.msra.mxu1 %v297_v16  ;;  %v258_v51 = vld [vmem:[%s1194_s30 + $0x48] sm:$0xff]  ;;  %v259_v53 = vld [vmem:[%s1194_s30 + $0x50] sm:$0xff]  ;;  %v260_v55 = vld [vmem:[%s1194_s30 + $0x58] sm:$0xff] }
  0x50   : > { %341 = vmatprep.subr.mxu0 %v296_v17  ;;  %801 = vmatprep.subr.mxu1 %v296_v17  ;;  %v274_v52 = vld [vmem:[%s1194_s30 + $0xc8] sm:$0xff]  ;;  %v275_v54 = vld [vmem:[%s1194_s30 + $0xd0] sm:$0xff]  ;;  %v276_v56 = vld [vmem:[%s1194_s30 + $0xd8] sm:$0xff] }
  0x51   : > { %342 = vmatpush1.msra.mxu0 %v295_v18  ;;  %817 = vmatpush1.msra.mxu1 %v295_v18  ;;  %v261_v57 = vld [vmem:[%s1194_s30 + $0x60] sm:$0xff]  ;;  %v262_v59 = vld [vmem:[%s1194_s30 + $0x68] sm:$0xff]  ;;  %v263_v61 = vld [vmem:[%s1194_s30 + $0x70] sm:$0xff] }
  0x52   : > { %343 = vmatprep.subr.mxu0 %v294_v19  ;;  %802 = vmatprep.subr.mxu1 %v294_v19  ;;  %v277_v58 = vld [vmem:[%s1194_s30 + $0xe0] sm:$0xff]  ;;  %v278_v60 = vld [vmem:[%s1194_s30 + $0xe8] sm:$0xff]  ;;  %v279_v62 = vld [vmem:[%s1194_s30 + $0xf0] sm:$0xff] }
  0x53   : > { %344 = vmatpush1.msra.mxu0 %v293_v20  ;;  %818 = vmatpush1.msra.mxu1 %v293_v20  ;;  %v264_v63 = vld [vmem:[%s1194_s30 + $0x78] sm:$0xff]  ;;  %v313_v5 = vld [vmem:[%s1463_s2] sm:$0x3] }
  0x54   : > { %345 = vmatprep.subr.mxu0 %v292_v21  ;;  %803 = vmatprep.subr.mxu1 %v292_v21  ;;  %v280_v1 = vld [vmem:[%s1194_s30 + $0xf8] sm:$0xff]  ;;  %v1272_v7 = vrot.slane %v313_v5, %v317_v4  ;;  %v1274_v8 = vrot.slane %v313_v5, %v321_v6 }
  0x55   : > { %346 = vmatpush1.msra.mxu0 %v291_v22  ;;  %819 = vmatpush1.msra.mxu1 %v291_v22 }
  0x56   : > { %347 = vmatprep.subr.mxu0 %v290_v23  ;;  %804 = vmatprep.subr.mxu1 %v290_v23 }
  0x57   : > { %348 = vmatpush1.msra.mxu0 %v289_v24  ;;  %820 = vmatpush1.msra.mxu1 %v289_v24 }
  0x58   : > { %349 = vmatprep.subr.mxu0 %v288_v25  ;;  %805 = vmatprep.subr.mxu1 %v288_v25 }
  0x59   : > { %350 = vmatpush1.msra.mxu0 %v287_v26  ;;  %821 = vmatpush1.msra.mxu1 %v287_v26 }
  0x5a   : > { %351 = vmatprep.subr.mxu0 %v286_v27  ;;  %806 = vmatprep.subr.mxu1 %v286_v27 }
  0x5b   : > { %352 = vmatpush1.msra.mxu0 %v285_v28  ;;  %822 = vmatpush1.msra.mxu1 %v285_v28 }
  0x5c   : > { %353 = vmatprep.subr.mxu0 %v284_v29  ;;  %807 = vmatprep.subr.mxu1 %v284_v29 }
  0x5d   : > { %354 = vmatpush1.msra.mxu0 %v283_v30  ;;  %823 = vmatpush1.msra.mxu1 %v283_v30 }
  0x5e   : > { %355 = vmatprep.subr.mxu0 %v282_v31  ;;  %808 = vmatprep.subr.mxu1 %v282_v31 }
  0x5f   : > { %356 = vmatpush1.msra.mxu0 %v281_v32  ;;  %824 = vmatpush1.msra.mxu1 %v281_v32 }
  0x60   : > { %390 = vmatmul.mubr.f32.vlgmr.msra.gmra.mxu0 %v249_v33  ;;  %486 = vmatmul.mubr.f32.vlgmr.msra.gmra.mxu1 %v265_v34 }
  0x61   : > { %395 = vmatprep.mubr.f32.mxu0 %v1051_v0  ;;  %491 = vmatprep.mubr.f32.mxu1 %v1051_v0 }
  0x64   : > { %396 = vmatmul.mubr.f32.gmra.mxu0 %v250_v35  ;;  %492 = vmatmul.mubr.f32.gmra.mxu1 %v266_v36 }
  0x65   : > { %401 = vmatprep.mubr.f32.mxu0 %v1051_v0  ;;  %497 = vmatprep.mubr.f32.mxu1 %v1051_v0 }
  0x68   : > { %402 = vmatmul.mubr.f32.gmra.mxu0 %v251_v37  ;;  %498 = vmatmul.mubr.f32.gmra.mxu1 %v267_v38 }
  0x69   : > { %407 = vmatprep.mubr.f32.mxu0 %v1051_v0  ;;  %503 = vmatprep.mubr.f32.mxu1 %v1051_v0 }
  0x6c   : > { %408 = vmatmul.mubr.f32.gmra.mxu0 %v252_v39  ;;  %504 = vmatmul.mubr.f32.gmra.mxu1 %v268_v40 }
  0x6d   : > { %413 = vmatprep.mubr.f32.mxu0 %v1051_v0  ;;  %509 = vmatprep.mubr.f32.mxu1 %v1051_v0 }
  0x70   : > { %414 = vmatmul.mubr.f32.gmra.mxu0 %v253_v41  ;;  %510 = vmatmul.mubr.f32.gmra.mxu1 %v269_v42 }
  0x71   : > { %419 = vmatprep.mubr.f32.mxu0 %v1051_v0  ;;  %515 = vmatprep.mubr.f32.mxu1 %v1051_v0 }
  0x74   : > { %420 = vmatmul.mubr.f32.gmra.mxu0 %v254_v43  ;;  %516 = vmatmul.mubr.f32.gmra.mxu1 %v270_v44 }
  0x75   : > { %425 = vmatprep.mubr.f32.mxu0 %v1051_v0  ;;  %521 = vmatprep.mubr.f32.mxu1 %v1051_v0 }
  0x78   : > { %426 = vmatmul.mubr.f32.gmra.mxu0 %v255_v45  ;;  %522 = vmatmul.mubr.f32.gmra.mxu1 %v271_v46 }
  0x79   : > { %431 = vmatprep.mubr.f32.mxu0 %v1051_v0  ;;  %527 = vmatprep.mubr.f32.mxu1 %v1051_v0 }
  0x7c   : > { %432 = vmatmul.mubr.f32.gmra.mxu0 %v256_v47  ;;  %528 = vmatmul.mubr.f32.gmra.mxu1 %v272_v48 }
  0x7d   : > { %437 = vmatprep.mubr.f32.mxu0 %v1051_v0  ;;  %533 = vmatprep.mubr.f32.mxu1 %v1051_v0 }
  0x80   : > { %438 = vmatmul.mubr.f32.gmra.mxu0 %v257_v49  ;;  %534 = vmatmul.mubr.f32.gmra.mxu1 %v273_v50 }
  0x81   : > { %443 = vmatprep.mubr.f32.mxu0 %v1051_v0  ;;  %539 = vmatprep.mubr.f32.mxu1 %v1051_v0 }
  0x84   : > { %444 = vmatmul.mubr.f32.gmra.mxu0 %v258_v51  ;;  %540 = vmatmul.mubr.f32.gmra.mxu1 %v274_v52 }
  0x85   : > { %449 = vmatprep.mubr.f32.mxu0 %v1051_v0  ;;  %545 = vmatprep.mubr.f32.mxu1 %v1051_v0 }
  0x88   : > { %450 = vmatmul.mubr.f32.gmra.mxu0 %v259_v53  ;;  %546 = vmatmul.mubr.f32.gmra.mxu1 %v275_v54 }
  0x89   : > { %455 = vmatprep.mubr.f32.mxu0 %v1051_v0  ;;  %551 = vmatprep.mubr.f32.mxu1 %v1051_v0 }
  0x8c   : > { %456 = vmatmul.mubr.f32.gmra.mxu0 %v260_v55  ;;  %552 = vmatmul.mubr.f32.gmra.mxu1 %v276_v56 }
  0x8d   : > { %461 = vmatprep.mubr.f32.mxu0 %v1051_v0  ;;  %557 = vmatprep.mubr.f32.mxu1 %v1051_v0 }
  0x90   : > { %462 = vmatmul.mubr.f32.gmra.mxu0 %v261_v57  ;;  %558 = vmatmul.mubr.f32.gmra.mxu1 %v277_v58 }
  0x91   : > { %467 = vmatprep.mubr.f32.mxu0 %v1051_v0  ;;  %563 = vmatprep.mubr.f32.mxu1 %v1051_v0 }
  0x94   : > { %468 = vmatmul.mubr.f32.gmra.mxu0 %v262_v59  ;;  %564 = vmatmul.mubr.f32.gmra.mxu1 %v278_v60 }
  0x95   : > { %473 = vmatprep.mubr.f32.mxu0 %v1051_v0  ;;  %569 = vmatprep.mubr.f32.mxu1 %v1051_v0 }
  0x98   : > { %474 = vmatmul.mubr.f32.gmra.mxu0 %v263_v61  ;;  %570 = vmatmul.mubr.f32.gmra.mxu1 %v279_v62 }
  0x99   : > { %479 = vmatprep.mubr.f32.mxu0 %v1051_v0  ;;  %575 = vmatprep.mubr.f32.mxu1 %v1051_v0 }
  0x9c   : > { %480 = vmatmul.mubr.f32.gmra.mxu0 %v264_v63  ;;  %576 = vmatmul.mubr.f32.gmra.mxu1 %v280_v1 }
 0x120   : > { %v391_v9 = vpop.f32.mrf.mxu0  ;;  %v487_v10 = vpop.f32.mrf.mxu1 }
 0x121   : > { %v392_v0 = vadd.f32 %v391_v9, %v1272_v7  ;;  %v488_v11 = vadd.f32 %v487_v10, %v1272_v7 }
 0x122   : > { %v393_v12 = vpop.f32.mrf.mxu0  ;;  %v489_v13 = vpop.f32.mrf.mxu1 }
 0x123   : > { %582 = vst [vmem:[%s1278_s29] sm:$0xff] %v392_v0  ;;  %614 = vst [vmem:[%s1278_s29 + $0x100] sm:$0xff] %v488_v11  ;;  %v394_v14 = vadd.f32 %v393_v12, %v1274_v8  ;;  %v490_v15 = vadd.f32 %v489_v13, %v1274_v8 }
 0x124   : > { %v397_v16 = vpop.f32.mrf.mxu0  ;;  %v493_v17 = vpop.f32.mrf.mxu1 }
 0x125   : > { %583 = vst [vmem:[%s1278_s29 + $0x8] sm:$0xff] %v394_v14  ;;  %615 = vst [vmem:[%s1278_s29 + $0x108] sm:$0xff] %v490_v15  ;;  %v398_v18 = vadd.f32 %v397_v16, %v1272_v7  ;;  %v494_v19 = vadd.f32 %v493_v17, %v1272_v7 }
 0x126   : > { %v399_v20 = vpop.f32.mrf.mxu0  ;;  %v495_v21 = vpop.f32.mrf.mxu1 }
 0x127   : > { %584 = vst [vmem:[%s1278_s29 + $0x10] sm:$0xff] %v398_v18  ;;  %616 = vst [vmem:[%s1278_s29 + $0x110] sm:$0xff] %v494_v19  ;;  %v400_v22 = vadd.f32 %v399_v20, %v1274_v8  ;;  %v496_v23 = vadd.f32 %v495_v21, %v1274_v8 }
 0x128   : > { %v403_v24 = vpop.f32.mrf.mxu0  ;;  %v499_v25 = vpop.f32.mrf.mxu1 }
 0x129   : > { %585 = vst [vmem:[%s1278_s29 + $0x18] sm:$0xff] %v400_v22  ;;  %617 = vst [vmem:[%s1278_s29 + $0x118] sm:$0xff] %v496_v23  ;;  %v404_v26 = vadd.f32 %v403_v24, %v1272_v7  ;;  %v500_v27 = vadd.f32 %v499_v25, %v1272_v7 }
 0x12a   : > { %v405_v28 = vpop.f32.mrf.mxu0  ;;  %v501_v29 = vpop.f32.mrf.mxu1 }
 0x12b   : > { %586 = vst [vmem:[%s1278_s29 + $0x20] sm:$0xff] %v404_v26  ;;  %618 = vst [vmem:[%s1278_s29 + $0x120] sm:$0xff] %v500_v27  ;;  %v406_v30 = vadd.f32 %v405_v28, %v1274_v8  ;;  %v502_v31 = vadd.f32 %v501_v29, %v1274_v8 }
 0x12c   : > { %v409_v32 = vpop.f32.mrf.mxu0  ;;  %v505_v33 = vpop.f32.mrf.mxu1 }
 0x12d   : > { %587 = vst [vmem:[%s1278_s29 + $0x28] sm:$0xff] %v406_v30  ;;  %619 = vst [vmem:[%s1278_s29 + $0x128] sm:$0xff] %v502_v31  ;;  %v410_v34 = vadd.f32 %v409_v32, %v1272_v7  ;;  %v506_v35 = vadd.f32 %v505_v33, %v1272_v7 }
 0x12e   : > { %v411_v36 = vpop.f32.mrf.mxu0  ;;  %v507_v37 = vpop.f32.mrf.mxu1 }
 0x12f   : > { %588 = vst [vmem:[%s1278_s29 + $0x30] sm:$0xff] %v410_v34  ;;  %620 = vst [vmem:[%s1278_s29 + $0x130] sm:$0xff] %v506_v35  ;;  %v412_v38 = vadd.f32 %v411_v36, %v1274_v8  ;;  %v508_v39 = vadd.f32 %v507_v37, %v1274_v8 }
 0x130   : > { %v415_v40 = vpop.f32.mrf.mxu0  ;;  %v511_v41 = vpop.f32.mrf.mxu1 }
 0x131   : > { %589 = vst [vmem:[%s1278_s29 + $0x38] sm:$0xff] %v412_v38  ;;  %621 = vst [vmem:[%s1278_s29 + $0x138] sm:$0xff] %v508_v39  ;;  %v416_v42 = vadd.f32 %v415_v40, %v1272_v7  ;;  %v512_v43 = vadd.f32 %v511_v41, %v1272_v7 }
 0x132   : > { %v417_v44 = vpop.f32.mrf.mxu0  ;;  %v513_v45 = vpop.f32.mrf.mxu1 }
 0x133   : > { %590 = vst [vmem:[%s1278_s29 + $0x40] sm:$0xff] %v416_v42  ;;  %622 = vst [vmem:[%s1278_s29 + $0x140] sm:$0xff] %v512_v43  ;;  %v418_v46 = vadd.f32 %v417_v44, %v1274_v8  ;;  %v514_v47 = vadd.f32 %v513_v45, %v1274_v8 }
 0x134   : > { %v421_v48 = vpop.f32.mrf.mxu0  ;;  %v517_v49 = vpop.f32.mrf.mxu1 }
 0x135   : > { %591 = vst [vmem:[%s1278_s29 + $0x48] sm:$0xff] %v418_v46  ;;  %623 = vst [vmem:[%s1278_s29 + $0x148] sm:$0xff] %v514_v47  ;;  %v422_v50 = vadd.f32 %v421_v48, %v1272_v7  ;;  %v518_v51 = vadd.f32 %v517_v49, %v1272_v7 }
 0x136   : > { %v423_v52 = vpop.f32.mrf.mxu0  ;;  %v519_v53 = vpop.f32.mrf.mxu1 }
 0x137   : > { %592 = vst [vmem:[%s1278_s29 + $0x50] sm:$0xff] %v422_v50  ;;  %624 = vst [vmem:[%s1278_s29 + $0x150] sm:$0xff] %v518_v51  ;;  %v424_v54 = vadd.f32 %v423_v52, %v1274_v8  ;;  %v520_v55 = vadd.f32 %v519_v53, %v1274_v8 }
 0x138   : > { %v427_v56 = vpop.f32.mrf.mxu0  ;;  %v523_v57 = vpop.f32.mrf.mxu1 }
 0x139   : > { %593 = vst [vmem:[%s1278_s29 + $0x58] sm:$0xff] %v424_v54  ;;  %625 = vst [vmem:[%s1278_s29 + $0x158] sm:$0xff] %v520_v55  ;;  %v428_v58 = vadd.f32 %v427_v56, %v1272_v7  ;;  %v524_v59 = vadd.f32 %v523_v57, %v1272_v7 }
 0x13a   : > { %v429_v60 = vpop.f32.mrf.mxu0  ;;  %v525_v61 = vpop.f32.mrf.mxu1 }
 0x13b   : > { %594 = vst [vmem:[%s1278_s29 + $0x60] sm:$0xff] %v428_v58  ;;  %626 = vst [vmem:[%s1278_s29 + $0x160] sm:$0xff] %v524_v59  ;;  %v430_v62 = vadd.f32 %v429_v60, %v1274_v8  ;;  %v526_v63 = vadd.f32 %v525_v61, %v1274_v8 }
 0x13c   : > { %v433_v1 = vpop.f32.mrf.mxu0  ;;  %v529_v2 = vpop.f32.mrf.mxu1 }
 0x13d   : > { %595 = vst [vmem:[%s1278_s29 + $0x68] sm:$0xff] %v430_v62  ;;  %627 = vst [vmem:[%s1278_s29 + $0x168] sm:$0xff] %v526_v63  ;;  %v434_v3 = vadd.f32 %v433_v1, %v1272_v7  ;;  %v530_v4 = vadd.f32 %v529_v2, %v1272_v7 }
 0x13e   : > { %v435_v5 = vpop.f32.mrf.mxu0  ;;  %v531_v6 = vpop.f32.mrf.mxu1 }
 0x13f   : > { %596 = vst [vmem:[%s1278_s29 + $0x70] sm:$0xff] %v434_v3  ;;  %628 = vst [vmem:[%s1278_s29 + $0x170] sm:$0xff] %v530_v4  ;;  %v436_v9 = vadd.f32 %v435_v5, %v1274_v8  ;;  %v532_v10 = vadd.f32 %v531_v6, %v1274_v8 }
 0x140   : > { %v439_v0 = vpop.f32.mrf.mxu0  ;;  %v535_v11 = vpop.f32.mrf.mxu1 }
 0x141   : > { %597 = vst [vmem:[%s1278_s29 + $0x78] sm:$0xff] %v436_v9  ;;  %629 = vst [vmem:[%s1278_s29 + $0x178] sm:$0xff] %v532_v10  ;;  %v440_v12 = vadd.f32 %v439_v0, %v1272_v7  ;;  %v536_v13 = vadd.f32 %v535_v11, %v1272_v7 }
 0x142   : > { %v441_v14 = vpop.f32.mrf.mxu0  ;;  %v537_v15 = vpop.f32.mrf.mxu1 }
 0x143   : > { %598 = vst [vmem:[%s1278_s29 + $0x80] sm:$0xff] %v440_v12  ;;  %630 = vst [vmem:[%s1278_s29 + $0x180] sm:$0xff] %v536_v13  ;;  %v442_v16 = vadd.f32 %v441_v14, %v1274_v8  ;;  %v538_v17 = vadd.f32 %v537_v15, %v1274_v8 }
 0x144   : > { %v445_v18 = vpop.f32.mrf.mxu0  ;;  %v541_v19 = vpop.f32.mrf.mxu1 }
 0x145   : > { %599 = vst [vmem:[%s1278_s29 + $0x88] sm:$0xff] %v442_v16  ;;  %631 = vst [vmem:[%s1278_s29 + $0x188] sm:$0xff] %v538_v17  ;;  %v446_v20 = vadd.f32 %v445_v18, %v1272_v7  ;;  %v542_v21 = vadd.f32 %v541_v19, %v1272_v7 }
 0x146   : > { %v447_v22 = vpop.f32.mrf.mxu0  ;;  %v543_v23 = vpop.f32.mrf.mxu1 }
 0x147   : > { %600 = vst [vmem:[%s1278_s29 + $0x90] sm:$0xff] %v446_v20  ;;  %632 = vst [vmem:[%s1278_s29 + $0x190] sm:$0xff] %v542_v21  ;;  %v448_v24 = vadd.f32 %v447_v22, %v1274_v8  ;;  %v544_v25 = vadd.f32 %v543_v23, %v1274_v8 }
 0x148   : > { %v451_v26 = vpop.f32.mrf.mxu0  ;;  %v547_v27 = vpop.f32.mrf.mxu1 }
 0x149   : > { %601 = vst [vmem:[%s1278_s29 + $0x98] sm:$0xff] %v448_v24  ;;  %633 = vst [vmem:[%s1278_s29 + $0x198] sm:$0xff] %v544_v25  ;;  %v452_v28 = vadd.f32 %v451_v26, %v1272_v7  ;;  %v548_v29 = vadd.f32 %v547_v27, %v1272_v7 }
 0x14a   : > { %v453_v30 = vpop.f32.mrf.mxu0  ;;  %v549_v31 = vpop.f32.mrf.mxu1 }
 0x14b   : > { %602 = vst [vmem:[%s1278_s29 + $0xa0] sm:$0xff] %v452_v28  ;;  %634 = vst [vmem:[%s1278_s29 + $0x1a0] sm:$0xff] %v548_v29  ;;  %v454_v32 = vadd.f32 %v453_v30, %v1274_v8  ;;  %v550_v33 = vadd.f32 %v549_v31, %v1274_v8 }
 0x14c   : > { %v457_v34 = vpop.f32.mrf.mxu0  ;;  %v553_v35 = vpop.f32.mrf.mxu1 }
 0x14d   : > { %603 = vst [vmem:[%s1278_s29 + $0xa8] sm:$0xff] %v454_v32  ;;  %635 = vst [vmem:[%s1278_s29 + $0x1a8] sm:$0xff] %v550_v33  ;;  %v458_v36 = vadd.f32 %v457_v34, %v1272_v7  ;;  %v554_v37 = vadd.f32 %v553_v35, %v1272_v7 }
 0x14e   : > { %v459_v38 = vpop.f32.mrf.mxu0  ;;  %v555_v39 = vpop.f32.mrf.mxu1 }
 0x14f   : > { %604 = vst [vmem:[%s1278_s29 + $0xb0] sm:$0xff] %v458_v36  ;;  %636 = vst [vmem:[%s1278_s29 + $0x1b0] sm:$0xff] %v554_v37  ;;  %v460_v40 = vadd.f32 %v459_v38, %v1274_v8  ;;  %v556_v41 = vadd.f32 %v555_v39, %v1274_v8 }
 0x150   : > { %v463_v42 = vpop.f32.mrf.mxu0  ;;  %v559_v43 = vpop.f32.mrf.mxu1 }
 0x151   : > { %605 = vst [vmem:[%s1278_s29 + $0xb8] sm:$0xff] %v460_v40  ;;  %637 = vst [vmem:[%s1278_s29 + $0x1b8] sm:$0xff] %v556_v41  ;;  %v464_v44 = vadd.f32 %v463_v42, %v1272_v7  ;;  %v560_v45 = vadd.f32 %v559_v43, %v1272_v7 }
 0x152   : > { %v465_v46 = vpop.f32.mrf.mxu0  ;;  %v561_v47 = vpop.f32.mrf.mxu1 }
 0x153   : > { %606 = vst [vmem:[%s1278_s29 + $0xc0] sm:$0xff] %v464_v44  ;;  %638 = vst [vmem:[%s1278_s29 + $0x1c0] sm:$0xff] %v560_v45  ;;  %v466_v48 = vadd.f32 %v465_v46, %v1274_v8  ;;  %v562_v49 = vadd.f32 %v561_v47, %v1274_v8 }
 0x154   : > { %v469_v50 = vpop.f32.mrf.mxu0  ;;  %v565_v51 = vpop.f32.mrf.mxu1 }
 0x155   : > { %607 = vst [vmem:[%s1278_s29 + $0xc8] sm:$0xff] %v466_v48  ;;  %639 = vst [vmem:[%s1278_s29 + $0x1c8] sm:$0xff] %v562_v49  ;;  %v470_v52 = vadd.f32 %v469_v50, %v1272_v7  ;;  %v566_v53 = vadd.f32 %v565_v51, %v1272_v7 }
 0x156   : > { %v471_v54 = vpop.f32.mrf.mxu0  ;;  %v567_v55 = vpop.f32.mrf.mxu1 }
 0x157   : > { %608 = vst [vmem:[%s1278_s29 + $0xd0] sm:$0xff] %v470_v52  ;;  %640 = vst [vmem:[%s1278_s29 + $0x1d0] sm:$0xff] %v566_v53  ;;  %v472_v56 = vadd.f32 %v471_v54, %v1274_v8  ;;  %v568_v57 = vadd.f32 %v567_v55, %v1274_v8 }
 0x158   : > { %v475_v58 = vpop.f32.mrf.mxu0  ;;  %v571_v59 = vpop.f32.mrf.mxu1 }
 0x159   : > { %609 = vst [vmem:[%s1278_s29 + $0xd8] sm:$0xff] %v472_v56  ;;  %641 = vst [vmem:[%s1278_s29 + $0x1d8] sm:$0xff] %v568_v57  ;;  %v476_v60 = vadd.f32 %v475_v58, %v1272_v7  ;;  %v572_v61 = vadd.f32 %v571_v59, %v1272_v7 }
 0x15a   : > { %v477_v62 = vpop.f32.mrf.mxu0  ;;  %v573_v63 = vpop.f32.mrf.mxu1 }
 0x15b   : > { %610 = vst [vmem:[%s1278_s29 + $0xe0] sm:$0xff] %v476_v60  ;;  %642 = vst [vmem:[%s1278_s29 + $0x1e0] sm:$0xff] %v572_v61  ;;  %v478_v1 = vadd.f32 %v477_v62, %v1274_v8  ;;  %v574_v2 = vadd.f32 %v573_v63, %v1274_v8 }
 0x15c   : > { %v481_v3 = vpop.f32.mrf.mxu0  ;;  %v577_v4 = vpop.f32.mrf.mxu1 }
 0x15d   : > { %611 = vst [vmem:[%s1278_s29 + $0xe8] sm:$0xff] %v478_v1  ;;  %643 = vst [vmem:[%s1278_s29 + $0x1e8] sm:$0xff] %v574_v2  ;;  %v482_v5 = vadd.f32 %v481_v3, %v1272_v7  ;;  %v578_v6 = vadd.f32 %v577_v4, %v1272_v7 }
 0x15e   : > { %v483_v9 = vpop.f32.mrf.mxu0  ;;  %v579_v10 = vpop.f32.mrf.mxu1 }
 0x15f   : > { %612 = vst [vmem:[%s1278_s29 + $0xf0] sm:$0xff] %v482_v5  ;;  %644 = vst [vmem:[%s1278_s29 + $0x1f0] sm:$0xff] %v578_v6  ;;  %v484_v0 = vadd.f32 %v483_v9, %v1274_v8  ;;  %v580_v11 = vadd.f32 %v579_v10, %v1274_v8 }
 0x161   : > { %613 = vst [vmem:[%s1278_s29 + $0xf8] sm:$0xff] %v484_v0  ;;  %645 = vst [vmem:[%s1278_s29 + $0x1f8] sm:$0xff] %v580_v11 }
 0x162   : > { %972 = shalt.err (!%p969_p5)
}
 0x163   : > { %s973_s26 = scalar_lea.hbm %s1405_s7, 8192  ;;  %s977_s20 = scalar_lea.hbm %s1464_s3, 16384 }
 0x164   : > { %p974_p7 = scmp.ne.s32.totalorder %s1405_s7, %s973_s26  ;;  %p978_p9 = scmp.lt.s32.totalorder %s1405_s7, %s1464_s3 }
 0x165   : > { %p979_p11 = scmp.lt.s32.totalorder %s977_s20, %s973_s26 }
 0x166   : > { %p975_p6 = pnand %p974_p7, %p1162_p13 }
 0x167   : > { %p980_p12 = por %p979_p11, %p978_p9 }
 0x168   : > { %p976_p4 = pneg %p975_p6 }
 0x16a   : > { %p981_p1 = pnand %p980_p12, %p976_p4 }
 0x16c   : > { %984 = shalt.err (!%p981_p1)
}
 0x16d   : > { %s1053_s29 = smov 256   ;;  %s1054_s4 = smov 16  }
 0x16e   : > { %831 = dma.vmem_to_hbm [thread:$0]  (%p1162_p13), %s1407_s21, 8192, %s1405_s7, %s647_s15, %s1053_s29, %s1053_s29, %s1054_s4  }
 0x16f PF: > { %s678_s5 = sand.u32 1, %s1023_s12   ;;  %p1476_p8 = scmp.ne.s32.totalorder %s1469_s23, 0 }
 0x170   : > { %p1477_p10 = scmp.ge.s32.totalorder %s1043_s17, 2  ;;  %s679_s6 = scalar_lea.sflag [#allocation4], %s678_s5 }
 0x172   : > { %p842_p0 = pnand %p1477_p10, %p1476_p8 }
 0x174   : > { %p843_p2 = pneg %p842_p0 }
 0x176   : > { %1018 = dma.done.wait (%p843_p2), %s679_s6, 8192  }
 0x177   : > { %1020 = vsyncadd (%p843_p2), %s679_s6, 4294959104  ;;  %s20_s17 = sadd.s32 1, %s1043_s17   ;;  %s1478_s12 = smov %s1027_s13 }
 0x178   : > { %p17_p3 = scmp.ge.s32.totalorder %s20_s17, 4   ;;  %s1479_s13 = smov %s1031_s14 }
 0x179   : > { %s1480_s14 = smov %s1171_s19  ;;  %s1481_s15 = smov %s1039_s16 }
 0x17a   : > { %s1482_s16 = smov %s1484_s28  ;;  %19 = sbr.rel (!%p17_p3) target bundleno = 7 (0x7), region = 85 }
 0x17f   :  { %684 = vsyncpa [#allocation3], 1 }
 0x180   :  { %686 = vsyncpa [#allocation3 + $0x1], 1 }
 0x181   :  { %687 = vsyncpa [#allocation6], 1 }
 0x182   :  { %688 = vsyncpa [#allocation4], 1 }
 0x183   :  { %690 = vsyncpa [#allocation4 + $0x1], 1 }

</bundles_post_ra>
